<compile_context>
chip_gen: v7x
topology: tpu7x:2x2x1
jax: 0.10.0
libtpu: 0.0.40
codegen_flags: <defaults>
</compile_context>

<pallas_src>
import functools

import jax
import jax.numpy as jnp
from jax import lax
from jax.experimental import pallas as pl
from jax.experimental.pallas import tpu as pltpu


APPROX_SOFTMAX_RECIP = True          # EUP approx reciprocal for softmax denominators
_FALLBACK_VMEM_CAP = 64 * 1024 * 1024  # safe on every generation if get_tpu_info fails


def _round_up(n, m):
    return ((n + m - 1) // m) * m


@functools.lru_cache(maxsize=None)
def _vmem_limit_bytes():
    cap = _FALLBACK_VMEM_CAP
    try:
        cap = int(pltpu.get_tpu_info().vmem_capacity_bytes)
    except Exception:
        pass
    # leave headroom: ~38 MiB on v7x (64 MiB physical), ~77 MiB on v5e/v6e (128 MiB)
    return min(int(cap * 0.6), 96 * 1024 * 1024)


def _compiler_params(*dims):
    return pltpu.CompilerParams(dimension_semantics=tuple(dims),
                                vmem_limit_bytes=_vmem_limit_bytes())


def _row_tile(n, dtype, max_rows=512):
    """dtype-aware row tile: ~n/2 (>=2 grid steps when possible), sublane-aligned."""
    sub = 16 if jnp.dtype(dtype).itemsize == 2 else 8
    half = _round_up(max(pl.cdiv(n, 2), 1), sub)
    return max(sub, min(max_rows, half))


def _layer_norm_f32(y, g, b, eps=1e-5):
    """Single-pass LN statistics (sum & sum-of-squares)."""
    d = y.shape[-1]
    s = jnp.sum(y, axis=-1, keepdims=True)
    ss = jnp.sum(y * y, axis=-1, keepdims=True)
    mu = s * (1.0 / d)
    var = ss * (1.0 / d) - mu * mu
    return (y - mu) * lax.rsqrt(var + eps) * g + b


def _softmax_last(s, approx):
    s = s - jnp.max(s, axis=-1, keepdims=True)
    p = jnp.exp(s)
    denom = jnp.sum(p, axis=-1, keepdims=True)
    if approx:
        return p * pl.reciprocal(denom, approx=True)
    return p / denom


# --------------------------------------------------------------------------------
# Kernel 1: fused (multi-input) Linear (+LN) (+ReLU) (+residual)
#   y = sum_i x_i @ W_i + b ; [LN] ; [ReLU] ; [res + scale*y]
# --------------------------------------------------------------------------------
def _linear_kernel(n_in, do_ln, do_relu, has_res, res_scale, *refs):
    xs = refs[:n_in]
    ws = refs[n_in:2 * n_in]
    idx = 2 * n_in
    b_ref = refs[idx]; idx += 1
    if do_ln:
        g_ref, beta_ref = refs[idx], refs[idx + 1]; idx += 2
    if has_res:
        res_ref = refs[idx]; idx += 1
    o_ref = refs[idx]

    y = jnp.dot(xs[0][...], ws[0][...], preferred_element_type=jnp.float32)
    for i in range(1, n_in):
        y = y + jnp.dot(xs[i][...], ws[i][...], preferred_element_type=jnp.float32)
    y = y + b_ref[...]
    if do_ln:
        y = _layer_norm_f32(y, g_ref[...], beta_ref[...])
    if do_relu:
        y = jnp.maximum(y, 0.0)
    if has_res:
        y = res_ref[...].astype(jnp.float32) + res_scale * y
    o_ref[...] = y.astype(o_ref.dtype)


def fused_linear(xs, ws, b, gamma=None, beta=None, *, do_ln=False, do_relu=False,
                 residual=None, residual_scale=1.0, max_block_rows=512, out_dtype=None):
    n = xs[0].shape[0]
    dout = ws[0].shape[1]
    tm = _row_tile(n, xs[0].dtype, max_block_rows)
    grid = (pl.cdiv(n, tm),)

    in_specs, args = [], []
    for x in xs:
        in_specs.append(pl.BlockSpec((tm, x.shape[1]), lambda i: (i, 0)))
        args.append(x)
    for w in ws:
        in_specs.append(pl.BlockSpec(w.shape, lambda i: (0, 0)))
        args.append(w)
    in_specs.append(pl.BlockSpec((1, dout), lambda i: (0, 0)))
    args.append(b.reshape(1, dout))
    if do_ln:
        in_specs += [pl.BlockSpec((1, dout), lambda i: (0, 0))] * 2
        args += [gamma.reshape(1, dout), beta.reshape(1, dout)]
    if residual is not None:
        in_specs.append(pl.BlockSpec((tm, dout), lambda i: (i, 0)))
        args.append(residual)

    kernel = functools.partial(_linear_kernel, len(xs), do_ln, do_relu,
                               residual is not None, float(residual_scale))
    return pl.pallas_call(
        kernel,
        out_shape=jax.ShapeDtypeStruct((n, dout), out_dtype or xs[0].dtype),
        grid=grid,
        in_specs=in_specs,
        out_specs=pl.BlockSpec((tm, dout), lambda i: (i, 0)),
        compiler_params=_compiler_params("parallel"),
    )(*args)


# --------------------------------------------------------------------------------
# Kernel 2: fused 2-layer MLP:  Linear -> LN -> ReLU -> Linear [-> LN]
# (intermediate stays in VMEM; used for spatial_semantic_fusion and final_pooler)
# --------------------------------------------------------------------------------
def _mlp2_kernel(n_in, do_ln2, *refs):
    xs = refs[:n_in]
    ws1 = refs[n_in:2 * n_in]
    idx = 2 * n_in
    b1_ref, g1_ref, be1_ref = refs[idx], refs[idx + 1], refs[idx + 2]; idx += 3
    w2_ref, b2_ref = refs[idx], refs[idx + 1]; idx += 2
    if do_ln2:
        g2_ref, be2_ref = refs[idx], refs[idx + 1]; idx += 2
    o_ref = refs[idx]

    h = jnp.dot(xs[0][...], ws1[0][...], preferred_element_type=jnp.float32)
    for i in range(1, n_in):
        h = h + jnp.dot(xs[i][...], ws1[i][...], preferred_element_type=jnp.float32)
    h = h + b1_ref[...]
    h = _layer_norm_f32(h, g1_ref[...], be1_ref[...])
    h = jnp.maximum(h, 0.0)

    y = jnp.dot(h.astype(w2_ref.dtype), w2_ref[...], preferred_element_type=jnp.float32)
    y = y + b2_ref[...]
    if do_ln2:
        y = _layer_norm_f32(y, g2_ref[...], be2_ref[...])
    o_ref[...] = y.astype(o_ref.dtype)


def fused_mlp2(xs, ws1, b1, g1, beta1, w2, b2, g2=None, beta2=None, *,
               do_ln2=False, max_block_rows=512, out_dtype=None):
    n = xs[0].shape[0]
    dmid = ws1[0].shape[1]
    dout = w2.shape[1]
    tm = _row_tile(n, xs[0].dtype, max_block_rows)
    grid = (pl.cdiv(n, tm),)

    in_specs, args = [], []
    for x in xs:
        in_specs.append(pl.BlockSpec((tm, x.shape[1]), lambda i: (i, 0)))
        args.append(x)
    for w in ws1:
        in_specs.append(pl.BlockSpec(w.shape, lambda i: (0, 0)))
        args.append(w)
    in_specs += [pl.BlockSpec((1, dmid), lambda i: (0, 0))] * 3
    args += [b1.reshape(1, dmid), g1.reshape(1, dmid), beta1.reshape(1, dmid)]
    in_specs += [pl.BlockSpec(w2.shape, lambda i: (0, 0)),
                 pl.BlockSpec((1, dout), lambda i: (0, 0))]
    args += [w2, b2.reshape(1, dout)]
    if do_ln2:
        in_specs += [pl.BlockSpec((1, dout), lambda i: (0, 0))] * 2
        args += [g2.reshape(1, dout), beta2.reshape(1, dout)]

    return pl.pallas_call(
        functools.partial(_mlp2_kernel, len(xs), do_ln2),
        out_shape=jax.ShapeDtypeStruct((n, dout), out_dtype or xs[0].dtype),
        grid=grid,
        in_specs=in_specs,
        out_specs=pl.BlockSpec((tm, dout), lambda i: (i, 0)),
        compiler_params=_compiler_params("parallel"),
    )(*args)


# --------------------------------------------------------------------------------
# Kernel 3: fused positional MLP  Linear(3,D/4) -> ReLU -> Linear(D/4,D) + residual
# --------------------------------------------------------------------------------
def _pos_mlp_kernel(x_ref, w1_ref, b1_ref, w2_ref, b2_ref, res_ref, o_ref):
    h = jnp.dot(x_ref[...], w1_ref[...], preferred_element_type=jnp.float32) + b1_ref[...]
    h = jnp.maximum(h, 0.0)
    y = jnp.dot(h.astype(w2_ref.dtype), w2_ref[...], preferred_element_type=jnp.float32)
    y = y + b2_ref[...] + res_ref[...].astype(jnp.float32)
    o_ref[...] = y.astype(o_ref.dtype)


def pos_mlp_with_residual(xyz2d, residual2d, p1, p2, *, max_block_rows=512):
    n = xyz2d.shape[0]
    d_hidden = p1['w_t'].shape[1]
    d_out = p2['w_t'].shape[1]
    tm = _row_tile(n, residual2d.dtype, max_block_rows)
    return pl.pallas_call(
        _pos_mlp_kernel,
        out_shape=jax.ShapeDtypeStruct((n, d_out), residual2d.dtype),
        grid=(pl.cdiv(n, tm),),
        in_specs=[
            pl.BlockSpec((tm, xyz2d.shape[1]), lambda i: (i, 0)),
            pl.BlockSpec(p1['w_t'].shape, lambda i: (0, 0)),
            pl.BlockSpec((1, d_hidden), lambda i: (0, 0)),
            pl.BlockSpec(p2['w_t'].shape, lambda i: (0, 0)),
            pl.BlockSpec((1, d_out), lambda i: (0, 0)),
            pl.BlockSpec((tm, d_out), lambda i: (i, 0)),
        ],
        out_specs=pl.BlockSpec((tm, d_out), lambda i: (i, 0)),
        compiler_params=_compiler_params("parallel"),
    )(xyz2d, p1['w_t'], p1['b'].reshape(1, d_hidden),
      p2['w_t'], p2['b'].reshape(1, d_out), residual2d)


# --------------------------------------------------------------------------------
# Kernel 4: nn.MultiheadAttention (batch_first, key==value), optional key-padding mask.
#   Head-major 3-D weights (prepared on host):
#     wq3/wk3/wv3 : (H, D, dh),  bq3/bk3/bv3 : (H, 1, dh),  wo3 : (H, dh, D),  bo : (1, D)
#   Kernel = four head-batched dot_generals + sum over heads; no in-kernel head
#   slicing / transposes / scratch stores.  One batch element per grid step.
# TODO(synk): for very large KV lengths (Np) add a KV grid axis with online-softmax
#             (flash-style) accumulators so VMEM is bounded independent of Np (v7x).
# --------------------------------------------------------------------------------
def _mha_kernel(num_heads, has_mask, approx, *refs):
    o_ref = refs[-1]
    ins = refs[:-1]
    if has_mask:
        q_ref, kv_ref, mb_ref = ins[0], ins[1], ins[2]
        w_refs = ins[3:]
    else:
        q_ref, kv_ref = ins[0], ins[1]
        mb_ref = None
        w_refs = ins[2:]
    wq_ref, bq_ref, wk_ref, bk_ref, wv_ref, bv_ref, wo_ref, bo_ref = w_refs

    q_in = q_ref[0]                       # (Lq, D)  compute dtype (bf16)
    kv_in = kv_ref[0]                     # (Lk, D)
    Lq, D = q_in.shape
    Lk = kv_in.shape[0]
    H = num_heads
    dh = D // H
    scale = 1.0 / float(dh) ** 0.5
    dt = q_in.dtype

    def bmm(a, b):                        # 'bqd,bdk->bqk' with leading batch dim
        return lax.dot_general(a, b, (((2,), (1,)), ((0,), (0,))),
                               preferred_element_type=jnp.float32)

    q_b = jnp.broadcast_to(q_in[None], (H, Lq, D))
    kv_b = jnp.broadcast_to(kv_in[None], (H, Lk, D))

    qh = ((bmm(q_b, wq_ref[...]) + bq_ref[...]) * scale).astype(dt)   # (H, Lq, dh)
    kh = (bmm(kv_b, wk_ref[...]) + bk_ref[...]).astype(dt)            # (H, Lk, dh)
    vh = (bmm(kv_b, wv_ref[...]) + bv_ref[...]).astype(dt)            # (H, Lk, dh)

    # scores: 'hqd,hkd->hqk'
    s = lax.dot_general(qh, kh, (((2,), (2,)), ((0,), (0,))),
                        preferred_element_type=jnp.float32)           # (H, Lq, Lk)
    if has_mask:
        s = s + mb_ref[...].astype(jnp.float32)                       # (1,1,Lk) bcast
    p = _softmax_last(s, approx)

    # PV: 'hqk,hkd->hqd'
    oh = lax.dot_general(p.astype(dt), vh, (((2,), (1,)), ((0,), (0,))),
                         preferred_element_type=jnp.float32)          # (H, Lq, dh)

    # per-head output projection, summed over heads == concat-heads @ Wo
    outh = lax.dot_general(oh.astype(dt), wo_ref[...], (((2,), (1,)), ((0,), (0,))),
                           preferred_element_type=jnp.float32)        # (H, Lq, D)
    out = jnp.sum(outh, axis=0) + bo_ref[...]                          # (Lq, D)
    o_ref[0] = out.astype(o_ref.dtype)


def mha(query, key_value, params, num_heads, mask_bias=None, *, approx=APPROX_SOFTMAX_RECIP):
    B, Lq, D = query.shape
    Lk = key_value.shape[1]
    dh = D // num_heads

    in_specs = [pl.BlockSpec((1, Lq, D), lambda i: (i, 0, 0)),
                pl.BlockSpec((1, Lk, D), lambda i: (i, 0, 0))]
    args = [query, key_value]
    if mask_bias is not None:
        in_specs.append(pl.BlockSpec((1, 1, Lk), lambda i: (i, 0, 0)))
        args.append(mask_bias)
    in_specs += [
        pl.BlockSpec((num_heads, D, dh), lambda i: (0, 0, 0)),
        pl.BlockSpec((num_heads, 1, dh), lambda i: (0, 0, 0)),
        pl.BlockSpec((num_heads, D, dh), lambda i: (0, 0, 0)),
        pl.BlockSpec((num_heads, 1, dh), lambda i: (0, 0, 0)),
        pl.BlockSpec((num_heads, D, dh), lambda i: (0, 0, 0)),
        pl.BlockSpec((num_heads, 1, dh), lambda i: (0, 0, 0)),
        pl.BlockSpec((num_heads, dh, D), lambda i: (0, 0, 0)),
        pl.BlockSpec((1, D), lambda i: (0, 0)),
    ]
    args += [params['wq3'], params['bq3'], params['wk3'], params['bk3'],
             params['wv3'], params['bv3'], params['wo3'], params['bo']]

    return pl.pallas_call(
        functools.partial(_mha_kernel, num_heads, mask_bias is not None, approx),
        out_shape=jax.ShapeDtypeStruct((B, Lq, D), query.dtype),
        grid=(B,),
        in_specs=in_specs,
        out_specs=pl.BlockSpec((1, Lq, D), lambda i: (i, 0, 0)),
        compiler_params=_compiler_params("parallel"),
    )(*args)


# --------------------------------------------------------------------------------
# Kernel 5: global pooling (mean over proposals + text-global attention pool)
# TODO(synk): the proposal-mean could be folded into the visual-refiner epilogue to
#             save one re-read of final_visual; kept separate for clarity.
# --------------------------------------------------------------------------------
def _pool_kernel(approx, fv_ref, ft_ref, tg_ref, vg_ref, tgc_ref):
    fv = fv_ref[...]                     # (1, K, D)
    ft = ft_ref[...]                     # (1, Lt, D)
    tg = tg_ref[...]                     # (1, 1, D)
    vg = jnp.mean(fv.astype(jnp.float32), axis=1, keepdims=True)                 # (1,1,D)
    s = jnp.einsum('bqd,bkd->bqk', tg, ft, preferred_element_type=jnp.float32)   # (1,1,Lt)
    p = _softmax_last(s, approx)
    tgc = jnp.einsum('bqk,bkd->bqd', p.astype(ft.dtype), ft,
                     preferred_element_type=jnp.float32)                         # (1,1,D)
    vg_ref[...] = vg.astype(vg_ref.dtype)
    tgc_ref[...] = tgc.astype(tgc_ref.dtype)


def global_pool(final_visual, final_text, text_global, *, approx=APPROX_SOFTMAX_RECIP):
    B, K, D = final_visual.shape
    Lt = final_text.shape[1]
    tg3 = text_global.reshape(B, 1, D)
    vg, tgc = pl.pallas_call(
        functools.partial(_pool_kernel, approx),
        out_shape=(jax.ShapeDtypeStruct((B, 1, D), final_visual.dtype),
                   jax.ShapeDtypeStruct((B, 1, D), final_visual.dtype)),
        grid=(B,),
        in_specs=[pl.BlockSpec((1, K, D), lambda i: (i, 0, 0)),
                  pl.BlockSpec((1, Lt, D), lambda i: (i, 0, 0)),
                  pl.BlockSpec((1, 1, D), lambda i: (i, 0, 0))],
        out_specs=(pl.BlockSpec((1, 1, D), lambda i: (i, 0, 0)),
                   pl.BlockSpec((1, 1, D), lambda i: (i, 0, 0))),
        compiler_params=_compiler_params("parallel"),
    )(final_visual, final_text, tg3)
    return vg.reshape(B, D), tgc.reshape(B, D)


# --------------------------------------------------------------------------------
# FPS / gather glue (plain JAX)
# TODO(synk): FPS is an inherently sequential data-dependent argmax loop; kept in
#             plain JAX (lax.fori_loop) rather than forcing it into a Pallas grid.
# --------------------------------------------------------------------------------
def furthest_point_sample(xyz, k):
    _, Np, _ = xyz.shape

    def per_batch(pts):
        def body(i, state):
            dist, idxs, far = state
            idxs = idxs.at[i].set(far)
            centroid = lax.dynamic_slice(pts, (far, 0), (1, 3))
            d = jnp.sum((pts - centroid) ** 2, axis=-1)
            dist = jnp.minimum(dist, d)
            far = jnp.argmax(dist).astype(jnp.int32)
            return dist, idxs, far

        state0 = (jnp.full((Np,), 1e10, jnp.float32), jnp.zeros((k,), jnp.int32),
                  jnp.int32(0))
        _, idxs, _ = lax.fori_loop(0, k, body, state0)
        return idxs

    return jax.vmap(per_batch)(xyz)


def gather_points(feats, idx):  # feats (B, Np, C), idx (B, K) -> (B, K, C)
    return jax.vmap(lambda f, i: f[i])(feats, idx)


# --------------------------------------------------------------------------------
# Parameter init (deterministic, synthetic) — weights bf16, biases / LN params f32
# --------------------------------------------------------------------------------
def init_params(key, D, *, num_heads=8, wdtype=jnp.bfloat16):
    keys = iter(jax.random.split(key, 64))

    def lin(din, dout):
        w = jax.random.normal(next(keys), (dout, din), jnp.float32) * 0.02
        b = jax.random.normal(next(keys), (dout,), jnp.float32) * 0.02
        return {'w_t': w.T.astype(wdtype), 'b': b}

    def lin_split(d1, d2, dout):       # pre-split (d1+d2, dout) weight -> no HBM concat
        w = jax.random.normal(next(keys), (dout, d1 + d2), jnp.float32) * 0.02
        b = jax.random.normal(next(keys), (dout,), jnp.float32) * 0.02
        wt = w.T.astype(wdtype)
        return {'w1_t': wt[:d1], 'w2_t': wt[d1:], 'b': b}

    def ln(d):
        return {'g': jnp.ones((d,), jnp.float32), 'b': jnp.zeros((d,), jnp.float32)}

    def mha_p(d):
        H = num_heads
        dh = d // H
        in_w = jax.random.normal(next(keys), (3 * d, d), jnp.float32) * 0.02
        in_b = jax.random.normal(next(keys), (3 * d,), jnp.float32) * 0.02
        wo = jax.random.normal(next(keys), (d, d), jnp.float32) * 0.02
        bo = jax.random.normal(next(keys), (d,), jnp.float32) * 0.02

        def head_w(w_slice):           # (d_out, d_in) torch layout -> (H, d_in, dh)
            return w_slice.T.reshape(d, H, dh).transpose(1, 0, 2).astype(wdtype)

        def head_b(b_slice):           # (d,) -> (H, 1, dh) f32
            return b_slice.reshape(H, dh)[:, None, :]

        return {'wq3': head_w(in_w[:d]),        'bq3': head_b(in_b[:d]),
                'wk3': head_w(in_w[d:2 * d]),   'bk3': head_b(in_b[d:2 * d]),
                'wv3': head_w(in_w[2 * d:]),    'bv3': head_b(in_b[2 * d:]),
                'wo3': wo.T.reshape(H, dh, d).astype(wdtype),
                'bo': bo.reshape(1, d)}

    return {
        'd2s': mha_p(D), 'tgv': mha_p(D), 'vgt': mha_p(D),
        'fusion1': lin_split(D, D, D), 'fusion_ln1': ln(D),
        'fusion2': lin(D, D), 'fusion_ln2': ln(D),
        'vref': lin(D, D), 'vref_ln': ln(D),
        'tref': lin(D, D), 'tref_ln': ln(D),
        'pool1': lin_split(D, D, D), 'pool_ln1': ln(D), 'pool2': lin(D, D),
        'pos1': lin(3, D // 4), 'pos2': lin(D // 4, D),
    }


# --------------------------------------------------------------------------------
# Forward pass
# --------------------------------------------------------------------------------
def feature_refinement_forward(params, feat_dict, text_dict, *, vision_num_queries,
                               num_heads=8, compute_dtype=jnp.bfloat16):
    Z_final = feat_dict['Z_final']                # (B, Np, D)
    points_xyz = feat_dict['fp_xyz'][-1]          # (B, Np, 3)
    text_feats = text_dict['text_feats']          # (B, Lt, D)
    text_global = text_dict['text_global_token']  # (B, D)
    text_mask = text_dict['text_token_mask']      # (B, Lt) bool, True = valid

    B, Np, D = Z_final.shape
    Lt = text_feats.shape[1]
    K = vision_num_queries

    fps_indices = furthest_point_sample(points_xyz, K)        # (B, K)
    sampled_xyz = gather_points(points_xyz, fps_indices)      # (B, K, 3) f32

    Z_c = Z_final.astype(compute_dtype)
    text_c = text_feats.astype(compute_dtype)
    pid_sampled = gather_points(Z_c, fps_indices)             # (B, K, D)

    visual_mask = jnp.ones((B, K), dtype=bool)

    # fused pos_embedding MLP + residual add -> sparse_features_with_pos
    sparse_with_pos = pos_mlp_with_residual(
        sampled_xyz.astype(compute_dtype).reshape(B * K, 3),
        pid_sampled.reshape(B * K, D),
        params['pos1'], params['pos2']).reshape(B, K, D)

    # dense_to_sparse_attention (no mask -> no zero-bias DMA)
    enhanced = mha(sparse_with_pos, Z_c, params['d2s'], num_heads)

    # spatial_semantic_fusion: both Linear layers fused, concat replaced by split weights
    visual_feats = fused_mlp2(
        [pid_sampled.reshape(B * K, D), enhanced.reshape(B * K, D)],
        [params['fusion1']['w1_t'], params['fusion1']['w2_t']], params['fusion1']['b'],
        params['fusion_ln1']['g'], params['fusion_ln1']['b'],
        params['fusion2']['w_t'], params['fusion2']['b'],
        params['fusion_ln2']['g'], params['fusion_ln2']['b'],
        do_ln2=True).reshape(B, K, D)

    # cross attentions
    text_bias = jnp.where(text_mask, 0.0, -1e9).astype(jnp.float32)[:, None, :]  # (B,1,Lt)
    text_guided_visual = mha(visual_feats, text_c, params['tgv'], num_heads,
                             mask_bias=text_bias)
    visual_grounded_text = mha(text_c, visual_feats, params['vgt'], num_heads)

    # refiners with fused residual (x + 0.15 * relu(ln(linear(x))))
    final_visual = fused_linear([text_guided_visual.reshape(B * K, D)],
                                [params['vref']['w_t']], params['vref']['b'],
                                params['vref_ln']['g'], params['vref_ln']['b'],
                                do_ln=True, do_relu=True,
                                residual=visual_feats.reshape(B * K, D),
                                residual_scale=0.15).reshape(B, K, D)

    final_text = fused_linear([visual_grounded_text.reshape(B * Lt, D)],
                              [params['tref']['w_t']], params['tref']['b'],
                              params['tref_ln']['g'], params['tref_ln']['b'],
                              do_ln=True, do_relu=True,
                              residual=text_c.reshape(B * Lt, D),
                              residual_scale=0.15).reshape(B, Lt, D)

    # global pooling (mean over proposals + text-global attention pooling)
    visual_global, text_global_context = global_pool(
        final_visual, final_text, text_global.astype(compute_dtype))

    # final_pooler: both Linear layers fused, split-weight dual input (no HBM concat)
    pooler_feat = fused_mlp2(
        [visual_global, text_global_context],
        [params['pool1']['w1_t'], params['pool1']['w2_t']], params['pool1']['b'],
        params['pool_ln1']['g'], params['pool_ln1']['b'],
        params['pool2']['w_t'], params['pool2']['b'],
        do_ln2=False)

    return {
        'fusion_feat_visual': final_visual,
        'visual_mask': visual_mask,
        'fusion_feat_language': final_text,
        'language_mask': text_mask,
        'fusion_feat_pooler': pooler_feat,
        'fps_indices': fps_indices,
        'sampled_coordinates': sampled_xyz,
    }


# --------------------------------------------------------------------------------
if __name__ == "__main__":
    # small shapes consistent with the module: hidden_dim must be divisible by 8 heads
    B, Np, D, K, Lt = 2, 64, 64, 16, 8

    key = jax.random.PRNGKey(0)
    k_param, k_z, k_xyz, k_txt, k_tg = jax.random.split(key, 5)

    params = init_params(k_param, D, num_heads=8)

    feat_dict = {
        'Z_final': jax.random.normal(k_z, (B, Np, D), jnp.float32),
        'fp_xyz': [jax.random.normal(k_xyz, (B, Np, 3), jnp.float32)],
    }
    lengths = jnp.array([Lt, Lt - 3], jnp.int32)
    text_dict = {
        'text_feats': jax.random.normal(k_txt, (B, Lt, D), jnp.float32),
        'text_global_token': jax.random.normal(k_tg, (B, D), jnp.float32),
        'text_token_mask': jnp.arange(Lt)[None, :] < lengths[:, None],
    }

    out = feature_refinement_forward(params, feat_dict, text_dict,
                                     vision_num_queries=K, num_heads=8)
    out = jax.block_until_ready(out)

    assert out['fusion_feat_visual'].shape == (B, K, D)
    assert out['fusion_feat_language'].shape == (B, Lt, D)
    assert out['fusion_feat_pooler'].shape == (B, D)
    assert out['fps_indices'].shape == (B, K)
    assert out['sampled_coordinates'].shape == (B, K, 3)
    print("KERNEL_OK")
</pallas_src>

<mosaic_0001>
module attributes {stable_mosaic.version = 11 : i64} {
  func.func @_pos_mlp_kernel(%arg0: i32, %arg1: memref<16x3xbf16, #tpu.memory_space<vmem>>, %arg2: memref<3x16xbf16, #tpu.memory_space<vmem>>, %arg3: memref<1x16xf32, #tpu.memory_space<vmem>>, %arg4: memref<16x64xbf16, #tpu.memory_space<vmem>>, %arg5: memref<1x64xf32, #tpu.memory_space<vmem>>, %arg6: memref<16x64xbf16, #tpu.memory_space<vmem>>, %arg7: memref<16x64xbf16, #tpu.memory_space<vmem>>) attributes {dimension_semantics = [#tpu.dimension_semantics<parallel>], iteration_bounds = array<i64: 2>, scalar_prefetch = 0 : i64, scratch_operands = 0 : i64, tpu.core_type = #tpu.core_type<tc>, window_params = [{transform_indices = @transform_0, window_bounds = array<i64: 16, 3>}, {pipeline_mode = #tpu.pipeline_mode<synchronous>, transform_indices = @transform_1, window_bounds = array<i64: 3, 16>}, {pipeline_mode = #tpu.pipeline_mode<synchronous>, transform_indices = @transform_2, window_bounds = array<i64: 1, 16>}, {pipeline_mode = #tpu.pipeline_mode<synchronous>, transform_indices = @transform_3, window_bounds = array<i64: 16, 64>}, {pipeline_mode = #tpu.pipeline_mode<synchronous>, transform_indices = @transform_4, window_bounds = array<i64: 1, 64>}, {transform_indices = @transform_5, window_bounds = array<i64: 16, 64>}, {transform_indices = @transform_6, window_bounds = array<i64: 16, 64>}]} {
    %c0 = arith.constant 0 : index
    %c0_0 = arith.constant 0 : index
    %0 = vector.load %arg1[%c0, %c0_0] : memref<16x3xbf16, #tpu.memory_space<vmem>>, vector<16x3xbf16>
    %c0_1 = arith.constant 0 : index
    %c0_2 = arith.constant 0 : index
    %1 = vector.load %arg2[%c0_1, %c0_2] : memref<3x16xbf16, #tpu.memory_space<vmem>>, vector<3x16xbf16>
    %cst = arith.constant dense<0.000000e+00> : vector<16x16xf32>
    %2 = tpu.matmul %0, %1, %cst {dimension_numbers = #tpu.dot_dimension_numbers<[1], [0], [0], [1], [0, 0, 1, 1], [], []>} : vector<16x3xbf16>, vector<3x16xbf16>, vector<16x16xf32> -> vector<16x16xf32>
    %c0_3 = arith.constant 0 : index
    %c0_4 = arith.constant 0 : index
    %3 = vector.load %arg3[%c0_3, %c0_4] : memref<1x16xf32, #tpu.memory_space<vmem>>, vector<1x16xf32>
    %4 = vector.broadcast %3 : vector<1x16xf32> to vector<16x16xf32>
    %5 = arith.addf %2, %4 : vector<16x16xf32>
    %cst_5 = arith.constant 0.000000e+00 : f32
    %6 = vector.broadcast %cst_5 : f32 to vector<16x16xf32>
    %7 = arith.maximumf %5, %6 : vector<16x16xf32>
    %8 = arith.truncf %7 : vector<16x16xf32> to vector<16x16xbf16>
    %c0_6 = arith.constant 0 : index
    %c0_7 = arith.constant 0 : index
    %9 = vector.load %arg4[%c0_6, %c0_7] : memref<16x64xbf16, #tpu.memory_space<vmem>>, vector<16x64xbf16>
    %cst_8 = arith.constant dense<0.000000e+00> : vector<16x64xf32>
    %10 = tpu.matmul %8, %9, %cst_8 {dimension_numbers = #tpu.dot_dimension_numbers<[1], [0], [0], [1], [0, 0, 1, 1], [], []>} : vector<16x16xbf16>, vector<16x64xbf16>, vector<16x64xf32> -> vector<16x64xf32>
    %c0_9 = arith.constant 0 : index
    %c0_10 = arith.constant 0 : index
    %11 = vector.load %arg5[%c0_9, %c0_10] : memref<1x64xf32, #tpu.memory_space<vmem>>, vector<1x64xf32>
    %12 = vector.broadcast %11 : vector<1x64xf32> to vector<16x64xf32>
    %13 = arith.addf %10, %12 : vector<16x64xf32>
    %c0_11 = arith.constant 0 : index
    %c0_12 = arith.constant 0 : index
    %14 = vector.load %arg6[%c0_11, %c0_12] : memref<16x64xbf16, #tpu.memory_space<vmem>>, vector<16x64xbf16>
    %15 = arith.extf %14 : vector<16x64xbf16> to vector<16x64xf32>
    %16 = arith.addf %13, %15 : vector<16x64xf32>
    %17 = arith.truncf %16 : vector<16x64xf32> to vector<16x64xbf16>
    %c0_13 = arith.constant 0 : index
    %c0_14 = arith.constant 0 : index
    %18 = vector.load %arg7[%c0_13, %c0_14] : memref<16x64xbf16, #tpu.memory_space<vmem>>, vector<16x64xbf16>
    tpu.vector_store %arg7[%c0_13, %c0_14], %17 {strides = array<i32>} : memref<16x64xbf16, #tpu.memory_space<vmem>>, vector<16x64xbf16>,
    return
  }
  func.func @transform_0(%arg0: i32) -> (i32, i32) {
    %c0_i32 = arith.constant 0 : i32
    %c0_i32_0 = arith.constant 0 : i32
    return %arg0, %c0_i32 : i32, i32
  }
  func.func @transform_1(%arg0: i32) -> (i32, i32) {
    %c0_i32 = arith.constant 0 : i32
    %c0_i32_0 = arith.constant 0 : i32
    %c0_i32_1 = arith.constant 0 : i32
    return %c0_i32, %c0_i32_0 : i32, i32
  }
  func.func @transform_2(%arg0: i32) -> (i32, i32) {
    %c0_i32 = arith.constant 0 : i32
    %c0_i32_0 = arith.constant 0 : i32
    %c0_i32_1 = arith.constant 0 : i32
    return %c0_i32, %c0_i32_0 : i32, i32
  }
  func.func @transform_3(%arg0: i32) -> (i32, i32) {
    %c0_i32 = arith.constant 0 : i32
    %c0_i32_0 = arith.constant 0 : i32
    %c0_i32_1 = arith.constant 0 : i32
    return %c0_i32, %c0_i32_0 : i32, i32
  }
  func.func @transform_4(%arg0: i32) -> (i32, i32) {
    %c0_i32 = arith.constant 0 : i32
    %c0_i32_0 = arith.constant 0 : i32
    %c0_i32_1 = arith.constant 0 : i32
    return %c0_i32, %c0_i32_0 : i32, i32
  }
  func.func @transform_5(%arg0: i32) -> (i32, i32) {
    %c0_i32 = arith.constant 0 : i32
    %c0_i32_0 = arith.constant 0 : i32
    return %arg0, %c0_i32 : i32, i32
  }
  func.func @transform_6(%arg0: i32) -> (i32, i32) {
    %c0_i32 = arith.constant 0 : i32
    %c0_i32_0 = arith.constant 0 : i32
    return %arg0, %c0_i32 : i32, i32
  }
}

</mosaic_0001>

<bundles_post_ra>
// kernel: tpu_custom_call.1
= control target key start
LH: loop header
LB: loop body
LE: loop exit
PB: predicated region body
PF: predicated region fallthrough
CT: control target
= control target key end

     0   :  { %11 = vsyncpa [#allocation3], 0  ;;  %s824_s0 = inlined_call_operand.vmem [shape: bf16[32,3], index: 0, kind: input, shape index: {}]   ;;  %s825_s1 = inlined_call_operand.vmem [shape: bf16[3,16], index: 1, kind: input, shape index: {}]   ;;  %s826_s2 = inlined_call_operand.vmem [shape: f32[1,16], index: 2, kind: input, shape index: {}]   ;;  %s827_s3 = inlined_call_operand.vmem [shape: bf16[16,64], index: 3, kind: input, shape index: {}]   ;;  %s828_s4 = inlined_call_operand.vmem [shape: f32[1,64], index: 4, kind: input, shape index: {}]   ;;  %s829_s5 = inlined_call_operand.vmem [shape: bf16[32,64], index: 5, kind: input, shape index: {}]   ;;  %s830_s6 = inlined_call_operand.hbm [shape: bf16[32,64], index: 6, kind: output, shape index: {}]  }
   0x1   :  { %13 = vsyncpa [#allocation3 + $0x1], 0  ;;  %s707_s21 = smov 0   ;;  %s709_s22 = smov 0  }
   0x2   :  { %s711_s23 = smov 0   ;;  %s713_s24 = smov 0  }
   0x3 LB: > { %s728_s25 = sadd.s32 4294967295, %s664_s24   ;;  %s511_s26 = sadd.s32 4294967294, %s664_s24   ;;  %s664_s24 = sphi %s713_s24, %s836_s24   ;;  %s660_s23 = sphi %s711_s23, %s835_s23   ;;  %s656_s22 = sphi %s709_s22, %s834_s22   ;;  %s652_s21 = sphi %s707_s21, %s833_s21  }
   0x4   : > { %s732_s27 = sadd.s32 1, %s664_s24   ;;  %s162_s28 = sadd.s32 1, %s660_s23 }
   0x5   : > { %s159_s29 = ssub.s32 %s664_s24, %s732_s27  ;;  %p172_p0 = scmp.ne.s32.totalorder %s660_s23, %s656_s22 }
   0x6   : > { %p160_p1 = scmp.eq.s32.totalorder %s159_s29, 0  ;;  %p173_p2 = scmp.eq.s32.totalorder %s728_s25, 1 }
   0x7   : > { %p178_p3 = scmp.ne.s32.totalorder %s656_s22, %s652_s21  ;;  %p179_p4 = scmp.eq.s32.totalorder %s511_s26, 1 }
   0x8   : > { %s743_s30 = scalar_select %p160_p1, %s660_s23, %s162_s28  }
   0x9   : > { %p745_p5 = por %p173_p2, %p172_p0  ;;  %p749_p6 = por %p179_p4, %p178_p3 }
   0xa   : > { %p514_p7 = scmp.ge.s32.totalorder %s664_s24, 1  ;;  %p227_p8 = scmp.lt.s32.totalorder %s664_s24, 3 }
   0xc   : > { %p228_p9 = pnand %p514_p7, %p227_p8 }
   0xd   : > { %v278_v0 = vld [vmem:[%s825_s1] sm:$0x3] (!%p228_p9)  ;;  %vm295_vm0 = vcmask (!%p228_p9), 1040384   ;;  %vm296_vm1 = vcmask (!%p228_p9), 1041408   ;;  %v666_v1 = vmov (!%p228_p9), 0.0   ;;  %v667_v2 = vmov (!%p228_p9), 65535  }
   0xe   : > { %231 = sbr.rel (%p228_p9) target bundleno = 480 (0x1e0), region = 44  ;;  %544 = vmatprep.subr.bf16.mxu0 (!%p228_p9), %v666_v1  ;;  %v297_v3 = vsel (!%p228_p9), %vm295_vm0, 4294967295, %v667_v2  ;;  %s516_s11 = sshll.u32 (!%p228_p9), %s728_s25, 1  ;;  %550 = vmatprep.subr.bf16.mxu1 (!%p228_p9), %v666_v1  ;;  %vm668_vm2 = vmmov (!%p228_p9), 0   ;;  %vm291_vm3 = vcmask (!%p228_p9), 23552   ;;  %v601_v7 = vld [vmem:[%s827_s3] sm:$0xff] (!%p228_p9)  }
   0xf   : > { %v298_v4 = vsel (!%p228_p9), %vm296_vm1, %v297_v3, 0  ;;  %546 = vmatprep.mubr.msk.bf16.mxu0 (!%p228_p9), %vm668_vm2, %v666_v1  ;;  %p263_p10 = scmp.lt.s32.totalorder (!%p228_p9), %s516_s11, 3  ;;  %552 = vmatprep.mubr.msk.bf16.mxu1 (!%p228_p9), %vm668_vm2, %v666_v1  ;;  %v520_v8 = vld [vmem:[%s826_s2] ss:$0 sm:$0xff] (!%p228_p9)  ;;  %vm361_vm4 = vcmask (!%p228_p9), 130048   ;;  %s259_s29 = sand.u32 (!%p228_p9), 1, %s656_s22  }
  0x10   : > { %v300_v5 = vand.u32 (!%p228_p9), %v298_v4, %v278_v0  ;;  %551 = vmatpush3.bf16.msra.mxu1 (!%p228_p9), %v601_v7  ;;  %s515_s9 = sshll.u32 (!%p228_p9), %s259_s29, 3  ;;  %v523_v19 = vld [vmem:[%s828_s4] ss:$0 sm:$0xff] (!%p228_p9)  ;;  %s535_s13 = sshll.u32 (!%p228_p9), %s728_s25, 7  ;;  %vm420_vm5 = vcmask (!%p228_p9), 519168  }
  0x11   : > { %s261_s14 = scalar_lea.vmem (!%p228_p9), [#allocation2], %s515_s9  ;;  %s779_s17 = scalar_lea.hbm (!%p228_p9), %s830_s6, %s535_s13 }
  0x12   : > { %545 = vmatpush3.bf16.msra.mxu0 (!%p228_p9), %v300_v5  ;;  %s783_s18 = scalar_lea.sflag (!%p228_p9), [#allocation3], %s259_s29  ;;  %s669_s19 = smov (!%p228_p9), [#allocation2]  }
  0x13   : > { %s606_s20 = sshll.u32 (!%p228_p9), %s669_s19, 4  ;;  %s607_s20 = int_to_ptr.vmem [resolvable:$false] %s606_s20 }
  0x14   : > { %s608_s26 = scalar_lea.vmem (!%p228_p9), %s607_s20, 256 }
  0x15   : > { %s838_s11 = smov (!%p263_p10, %s516_s11), 3 }
  0x16   : > { %s517_s12 = sshll.u32 %s838_s11, 2 }
  0x17   : > { %s266_s15 = scalar_lea.vmem %s824_s0, %s517_s12  ;;  %s272_s28 = scalar_lea.vmem %s829_s5, %s517_s12 }
  0x18   : > { %v600_v6 = vld [vmem:[%s266_s15] sm:$0xff]   ;;  %s437_s12 = sshll.u32 %s261_s14, 4  ;;  %s781_s12 = int_to_ptr.vmem [resolvable:$true] %s437_s12 }
  0x19   : > { %547 = vmatmul.mubr.msk.bf16.vlgmr.msra.gmra.mrb[0].mxu0 %vm291_vm3, %v600_v6  ;;  %v537_v18 = vld [vmem:[%s272_s28] sm:$0xff]   ;;  %s602_s25 = scalar_lea.vmem %s781_s12, 128  ;;  %p609_p0 = scmp.lt.s32.totalorder %s781_s12, %s607_s20 }
  0x1a   : > { %v538_v20 = vunpack.c.l.bf16 %v537_v18  ;;  %v539_v24 = vunpack.c.h.bf16 %v537_v18  ;;  %p603_p11 = scmp.ne.s32.totalorder %s781_s12, %s602_s25  ;;  %p610_p1 = scmp.lt.s32.totalorder %s608_s26, %s602_s25 }
  0x1c   : > { %p604_p12 = pnand %p603_p11, %p745_p5  ;;  %p611_p2 = por %p610_p1, %p609_p0 }
  0x1e   : > { %p605_p13 = pneg %p604_p12 }
  0x20   : > { %p612_p3 = pnand %p611_p2, %p605_p13 }
  0xec   : > { %v336_v9 = vpop.f32.mrb[0].mxu0 }
  0xed   : > { %v337_v10 = vadd.f32 %v520_v8, %v336_v9  ;;  %v548_v11 = vpop.f32.mrb[1].mxu0 }
  0xee   : > { %v339_v12 = vpop.f32.mrb[2].mxu0 }
  0xef   : > { %v340_v13 = vadd.f32 %v520_v8, %v339_v12  ;;  %v549_v14 = vpop.f32.mrb[3].mxu0  ;;  %v343_v15 = vmax.f32 %v337_v10, 0.0 }
  0xf1   : > { %v344_v16 = vmax.f32 %v340_v13, 0.0 }
  0xf3   : > { %v345_v17 = vpack.c.bf16 %v344_v16, %v343_v15 }
  0xf5   : > { %553 = vmatmul.mubr.msk.bf16.vlgmr.msra.gmra.mrb[0].mxu1 %vm361_vm4, %v345_v17 }
 0x1c8   : > { %v399_v21 = vpop.f32.mrb[0].mxu1 }
 0x1c9   : > { %v400_v22 = vadd.f32 %v523_v19, %v399_v21  ;;  %v554_v23 = vpop.f32.mrb[1].mxu1 }
 0x1ca   : > { %v402_v25 = vpop.f32.mrb[2].mxu1 }
 0x1cb   : > { %v410_v26 = vadd.f32 %v538_v20, %v400_v22  ;;  %v403_v27 = vadd.f32 %v523_v19, %v402_v25  ;;  %v555_v28 = vpop.f32.mrb[3].mxu1 }
 0x1cd   : > { %v533_v29 = vpack.c.bf16 %v410_v26, %v410_v26  ;;  %v411_v30 = vadd.f32 %v539_v24, %v403_v27 }
 0x1cf   : > { %421 = vst.msk [vmem:[%s261_s14] sm:$0xf] %vm420_vm5, %v533_v29  ;;  %v534_v31 = vpack.c.bf16 %v411_v30, %v411_v30 }
 0x1d1   : > { %422 = vst.msk [vmem:[%s261_s14 + $0x4] sm:$0xf] %vm420_vm5, %v534_v31 }
 0x1d2   : > { %615 = shalt.err (!%p612_p3)
}
 0x1d3   : > { %s616_s28 = scalar_lea.hbm %s779_s17, 128  ;;  %s620_s10 = scalar_lea.hbm %s830_s6, 256 }
 0x1d4   : > { %p617_p4 = scmp.ne.s32.totalorder %s779_s17, %s616_s28  ;;  %p621_p9 = scmp.lt.u32.totalorder %s779_s17, %s830_s6 }
 0x1d5   : > { %p622_p10 = scmp.lt.u32.totalorder %s620_s10, %s616_s28  ;;  %p624_p12 = scmp.lt.u32.totalorder %s616_s28, %s779_s17 }
 0x1d6   : > { %p618_p7 = pnand %p617_p4, %p745_p5 }
 0x1d7   : > { %p623_p11 = por %p622_p10, %p621_p9 }
 0x1d8   : > { %p619_p8 = pneg %p618_p7 }
 0x1d9   : > { %p625_p13 = por %p624_p12, %p623_p11 }
 0x1db   : > { %p626_p0 = pnand %p625_p13, %p619_p8 }
 0x1dd   : > { %629 = shalt.err (!%p626_p0)
}
 0x1de   : > { %s670_s14 = smov 64   ;;  %s671_s15 = smov 4  }
 0x1df   : > { %556 = dma.vmem_to_hbm [thread:$0]  (%p745_p5), %s781_s12, 128, %s779_s17, %s783_s18, %s670_s14, %s670_s14, %s671_s15  }
 0x1e0 PF: > { %p562_p1 = scmp.ge.s32.totalorder %s664_s24, 2  ;;  %s452_s16 = sand.u32 1, %s652_s21  }
 0x1e1   : > { %s453_s25 = scalar_lea.sflag [#allocation3], %s452_s16 }
 0x1e2   : > { %p559_p2 = pnand %p562_p1, %p749_p6 }
 0x1e4   : > { %647 = dma.done.wait (!%p559_p2), %s453_s25, 128  }
 0x1e5   : > { %649 = vsyncadd (!%p559_p2), %s453_s25, 4294967168  ;;  %p16_p3 = scmp.ge.s32.totalorder %s732_s27, 4   ;;  %s833_s21 = smov %s656_s22 }
 0x1e6   : > { %s834_s22 = smov %s660_s23  ;;  %s835_s23 = smov %s743_s30 }
 0x1e7   : > { %s836_s24 = smov %s732_s27  ;;  %18 = sbr.rel (!%p16_p3) target bundleno = 3 (0x3), region = 82 }
 0x1ee   :  { %458 = vsyncpa [#allocation3], 1 }
 0x1ef   :  { %460 = vsyncpa [#allocation3 + $0x1], 1 }

</bundles_post_ra>
